<compile_context>
chip_gen: v6e
topology: v6e:2x2x1
jax: 0.10.0
libtpu: 0.0.40
codegen_flags: <defaults>
</compile_context>

<pallas_src>
import numpy as np
import jax
import jax.numpy as jnp
from jax.experimental import pallas as pl
from jax.experimental.pallas import tpu as pltpu


# ----------------------------------------------------------------------------
# Host-side setup: deterministic triangle mesh and its graph operator
# ----------------------------------------------------------------------------
def make_grid_faces(rows: int, cols: int) -> np.ndarray:
    """Triangulated (rows x cols) grid -> faces (F, 3), numV = rows*cols."""
    faces = []
    for r in range(rows - 1):
        for c in range(cols - 1):
            v00 = r * cols + c
            v01 = r * cols + (c + 1)
            v10 = (r + 1) * cols + c
            v11 = (r + 1) * cols + (c + 1)
            faces.append([v00, v01, v10])
            faces.append([v01, v11, v10])
    return np.asarray(faces, dtype=np.int32)


def build_adjacency_and_invdeg(faces: np.ndarray, num_v: int):
    """Symmetric 0/1 adjacency A and 1/degree (degree clamped to >=1)."""
    adj = np.zeros((num_v, num_v), dtype=np.float32)
    for (i, j, k) in faces:
        adj[i, j] = adj[j, i] = 1.0
        adj[j, k] = adj[k, j] = 1.0
        adj[i, k] = adj[k, i] = 1.0
    deg = np.maximum(adj.sum(axis=1), 1.0)
    inv_deg = (1.0 / deg).astype(np.float32)
    return adj, inv_deg


# ----------------------------------------------------------------------------
# Pallas kernel + wrapper
# ----------------------------------------------------------------------------
def _pick_tile(v: int) -> int:
    """Largest lane-aligned tile (<=512) dividing V; full width if V not /128."""
    if v % 128 != 0:
        return v  # block equal to full array dim is always legal
    for t in (512, 256, 128):
        if v % t == 0:
            return t
    return v


def graph_laplacian_loss(adj: jax.Array, inv_deg: jax.Array, verts: jax.Array,
                         *, tn: int | None = None, tk: int | None = None) -> jax.Array:
    """adj: (V, V) 0/1 (bf16 ok), inv_deg: (V,) f32, verts: (B, V, 3) f32 -> scalar."""
    B, V, C = verts.shape
    assert C == 3 and adj.shape == (V, V) and inv_deg.shape == (V,)

    tn = _pick_tile(V) if tn is None else tn
    tk = _pick_tile(V) if tk is None else tk
    assert V % tn == 0 and V % tk == 0
    num_n, num_k = V // tn, V // tk

    # Channel-major lane-dense slab with 8-aligned channel blocks:
    #   row c*b_pad + b , col j  =  verts[b, j, c]   (rows [B:b_pad) are zero)
    b_pad = ((B + 7) // 8) * 8
    m_pad = 3 * b_pad
    xc = jnp.transpose(verts, (2, 0, 1))                     # (3, B, V)
    xc = jnp.pad(xc, ((0, 0), (0, b_pad - B), (0, 0)))       # (3, b_pad, V)
    x2d = xc.reshape(m_pad, V).astype(jnp.float32)           # (m_pad, V)

    inv_deg_row = inv_deg.reshape(1, V).astype(jnp.float32)  # lane vector

    def kernel(xk_ref, xn_ref, a_ref, invd_ref, norms_ref, acc_ref):
        k = pl.program_id(1)

        @pl.when(k == 0)
        def _init():
            acc_ref[...] = jnp.zeros_like(acc_ref)

        # Neighbour sums: (m_pad, tk) @ (tk, tn).  A is exact 0/1 in bf16;
        # upcast to f32 in-vreg (HBM stream stays half-width).
        acc_ref[...] += jnp.dot(xk_ref[...],
                                a_ref[...].astype(jnp.float32),
                                preferred_element_type=jnp.float32)

        @pl.when(k == pl.num_programs(1) - 1)
        def _finalize():
            # Lx = x - (sum of neighbours) * inv_deg   (inv_deg broadcast over rows)
            lx = xn_ref[...] - acc_ref[...] * invd_ref[...]       # (m_pad, tn)
            sq = lx * lx
            # Channel reduction on 8-aligned sublane blocks (pure vreg selects).
            ssum = (sq[0 * b_pad:1 * b_pad]
                    + sq[1 * b_pad:2 * b_pad]
                    + sq[2 * b_pad:3 * b_pad])                    # (b_pad, tn)
            norms_ref[...] = jnp.sqrt(ssum)                       # lane-dense store

    # VMEM budget: double-buffered inputs + output + accumulator scratch.
    a_itemsize = np.dtype(adj.dtype).itemsize
    vmem_needed = (2 * m_pad * tk * 4          # X k-slices
                   + 2 * m_pad * tn * 4        # X n-slice (resident over k)
                   + 2 * tk * tn * a_itemsize  # A tiles
                   + 2 * tn * 4                # inv_deg tiles
                   + 2 * b_pad * tn * 4        # output tiles
                   + m_pad * tn * 4)           # accumulator scratch
    vmem_limit = int(min(max(2 * vmem_needed, 32 * 1024 * 1024),
                         100 * 1024 * 1024))

    norms = pl.pallas_call(
        kernel,
        out_shape=jax.ShapeDtypeStruct((b_pad, V), jnp.float32),
        grid_spec=pltpu.PrefetchScalarGridSpec(
            num_scalar_prefetch=0,
            grid=(num_n, num_k),                                   # reduction axis last
            in_specs=[
                pl.BlockSpec((m_pad, tk), lambda n, k: (0, k)),    # X, k-slice (matmul LHS)
                pl.BlockSpec((m_pad, tn), lambda n, k: (0, n)),    # X, n-slice (epilogue)
                pl.BlockSpec((tk, tn), lambda n, k: (k, n)),       # A tile (no transpose)
                pl.BlockSpec((1, tn), lambda n, k: (0, n)),        # inv_deg lane-vector
            ],
            out_specs=pl.BlockSpec((b_pad, tn), lambda n, k: (0, n)),
            scratch_shapes=[pltpu.VMEM((m_pad, tn), jnp.float32)],
        ),
        compiler_params=pltpu.CompilerParams(
            dimension_semantics=("parallel", "arbitrary"),  # megacore on output tiles
            vmem_limit_bytes=vmem_limit,
        ),
    )(x2d, x2d, adj, inv_deg_row)

    # Drop zero padding rows; final scalar mean over B*V norms in the wrapper.
    return jnp.mean(norms[:B])


# ----------------------------------------------------------------------------
# Pure-JAX reference (exact L = I - D^{-1} A formulation, f32)
# ----------------------------------------------------------------------------
def graph_laplacian_loss_ref(adj_f32: jax.Array, inv_deg: jax.Array,
                             verts: jax.Array) -> jax.Array:
    V = adj_f32.shape[0]
    lap = jnp.eye(V, dtype=jnp.float32) - adj_f32 * inv_deg[:, None]
    lx = jnp.einsum("ij,bjc->bic", lap, verts,
                    precision=jax.lax.Precision.HIGHEST)      # (B, V, 3)
    per_vertex = jnp.sqrt(jnp.sum(lx * lx, axis=-1))          # (B, V)
    return jnp.mean(per_vertex)


if __name__ == "__main__":
    # Small deterministic problem: 8x32 grid mesh -> V = 256 vertices, B = 2
    ROWS, COLS = 8, 32
    NUM_V = ROWS * COLS
    BATCH = 2

    faces = make_grid_faces(ROWS, COLS)
    adj_np, inv_deg_np = build_adjacency_and_invdeg(faces, NUM_V)
    adj_bf16 = jnp.asarray(adj_np, dtype=jnp.bfloat16)   # 0/1 -> exact in bf16
    adj_f32 = jnp.asarray(adj_np, dtype=jnp.float32)
    inv_deg = jnp.asarray(inv_deg_np)

    key = jax.random.PRNGKey(0)
    verts = jax.random.normal(key, (BATCH, NUM_V, 3), dtype=jnp.float32)

    ref = jax.block_until_ready(graph_laplacian_loss_ref(adj_f32, inv_deg, verts))

    # Exercise the multi-tile path (grid = (2, 2): parallel N axis + K reduction).
    loss_tiled = jax.block_until_ready(
        graph_laplacian_loss(adj_bf16, inv_deg, verts, tn=128, tk=128))
    assert np.allclose(np.asarray(loss_tiled), np.asarray(ref),
                       rtol=1e-5, atol=1e-5), (
        f"pallas(tiled)={float(loss_tiled)} ref={float(ref)}")

    # Default (auto-picked) tiles: single block, grid = (1, 1).
    loss_auto = jax.block_until_ready(
        graph_laplacian_loss(adj_bf16, inv_deg, verts))
    assert np.allclose(np.asarray(loss_auto), np.asarray(ref),
                       rtol=1e-5, atol=1e-5), (
        f"pallas(auto)={float(loss_auto)} ref={float(ref)}")

    print("KERNEL_OK")
</pallas_src>

<mosaic_0001>
module attributes {stable_mosaic.version = 11 : i64} {
  func.func @kernel(%arg0: i32, %arg1: i32, %arg2: memref<24x128xf32, #tpu.memory_space<vmem>>, %arg3: memref<24x128xf32, #tpu.memory_space<vmem>>, %arg4: memref<128x128xbf16, #tpu.memory_space<vmem>>, %arg5: memref<1x128xf32, #tpu.memory_space<vmem>>, %arg6: memref<8x128xf32, #tpu.memory_space<vmem>>, %arg7: memref<24x128xf32, #tpu.memory_space<vmem>>) attributes {dimension_semantics = [#tpu.dimension_semantics<parallel>, #tpu.dimension_semantics<arbitrary>], iteration_bounds = array<i64: 2, 2>, scalar_prefetch = 0 : i64, scratch_operands = 1 : i64, tpu.core_type = #tpu.core_type<tc>, window_params = [{transform_indices = @transform_0, window_bounds = array<i64: 24, 128>}, {transform_indices = @transform_1, window_bounds = array<i64: 24, 128>}, {transform_indices = @transform_2, window_bounds = array<i64: 128, 128>}, {transform_indices = @transform_3, window_bounds = array<i64: 1, 128>}, {transform_indices = @transform_4, window_bounds = array<i64: 8, 128>}]} {
    %c0_i32 = arith.constant 0 : i32
    %0 = arith.cmpi eq, %arg1, %c0_i32 : i32
    %1 = arith.extui %0 : i1 to i32
    %c0_i32_0 = arith.constant 0 : i32
    %2 = arith.cmpi ne, %1, %c0_i32_0 : i32
    scf.if %2 {
      %cst_9 = arith.constant 0.000000e+00 : f32
      %13 = vector.broadcast %cst_9 : f32 to vector<24x128xf32>
      %c0_10 = arith.constant 0 : index
      %c0_11 = arith.constant 0 : index
      %14 = vector.load %arg7[%c0_10, %c0_11] : memref<24x128xf32, #tpu.memory_space<vmem>>, vector<24x128xf32>
      tpu.vector_store %arg7[%c0_10, %c0_11], %13 {strides = array<i32>} : memref<24x128xf32, #tpu.memory_space<vmem>>, vector<24x128xf32>,
    } else {
    }
    %c0 = arith.constant 0 : index
    %c0_1 = arith.constant 0 : index
    %3 = vector.load %arg7[%c0, %c0_1] : memref<24x128xf32, #tpu.memory_space<vmem>>, vector<24x128xf32>
    %c0_2 = arith.constant 0 : index
    %c0_3 = arith.constant 0 : index
    %4 = vector.load %arg2[%c0_2, %c0_3] : memref<24x128xf32, #tpu.memory_space<vmem>>, vector<24x128xf32>
    %c0_4 = arith.constant 0 : index
    %c0_5 = arith.constant 0 : index
    %5 = vector.load %arg4[%c0_4, %c0_5] : memref<128x128xbf16, #tpu.memory_space<vmem>>, vector<128x128xbf16>
    %6 = arith.extf %5 : vector<128x128xbf16> to vector<128x128xf32>
    %cst = arith.constant dense<0.000000e+00> : vector<24x128xf32>
    %7 = tpu.matmul %4, %6, %cst {dimension_numbers = #tpu.dot_dimension_numbers<[1], [0], [0], [1], [0, 0, 1, 1], [], []>} : vector<24x128xf32>, vector<128x128xf32>, vector<24x128xf32> -> vector<24x128xf32>
    %8 = arith.addf %3, %7 : vector<24x128xf32>
    %c0_6 = arith.constant 0 : index
    %c0_7 = arith.constant 0 : index
    %9 = vector.load %arg7[%c0_6, %c0_7] : memref<24x128xf32, #tpu.memory_space<vmem>>, vector<24x128xf32>
    tpu.vector_store %arg7[%c0_6, %c0_7], %8 {strides = array<i32>} : memref<24x128xf32, #tpu.memory_space<vmem>>, vector<24x128xf32>,
    %c1_i32 = arith.constant 1 : i32
    %10 = arith.cmpi eq, %arg1, %c1_i32 : i32
    %11 = arith.extui %10 : i1 to i32
    %c0_i32_8 = arith.constant 0 : i32
    %12 = arith.cmpi ne, %11, %c0_i32_8 : i32
    scf.if %12 {
      %c0_9 = arith.constant 0 : index
      %c0_10 = arith.constant 0 : index
      %13 = vector.load %arg3[%c0_9, %c0_10] : memref<24x128xf32, #tpu.memory_space<vmem>>, vector<24x128xf32>
      %c0_11 = arith.constant 0 : index
      %c0_12 = arith.constant 0 : index
      %14 = vector.load %arg7[%c0_11, %c0_12] : memref<24x128xf32, #tpu.memory_space<vmem>>, vector<24x128xf32>
      %c0_13 = arith.constant 0 : index
      %c0_14 = arith.constant 0 : index
      %15 = vector.load %arg5[%c0_13, %c0_14] : memref<1x128xf32, #tpu.memory_space<vmem>>, vector<1x128xf32>
      %16 = vector.broadcast %15 : vector<1x128xf32> to vector<24x128xf32>
      %17 = arith.mulf %14, %16 : vector<24x128xf32>
      %18 = arith.subf %13, %17 : vector<24x128xf32>
      %19 = arith.mulf %18, %18 : vector<24x128xf32>
      %20 = vector.extract_strided_slice %19 {offsets = [0, 0], sizes = [8, 128], strides = [1, 1]} : vector<24x128xf32> to vector<8x128xf32>
      %21 = vector.extract_strided_slice %19 {offsets = [8, 0], sizes = [8, 128], strides = [1, 1]} : vector<24x128xf32> to vector<8x128xf32>
      %22 = arith.addf %20, %21 : vector<8x128xf32>
      %23 = vector.extract_strided_slice %19 {offsets = [16, 0], sizes = [8, 128], strides = [1, 1]} : vector<24x128xf32> to vector<8x128xf32>
      %24 = arith.addf %22, %23 : vector<8x128xf32>
      %25 = math.sqrt %24 : vector<8x128xf32>
      %c0_15 = arith.constant 0 : index
      %c0_16 = arith.constant 0 : index
      %26 = vector.load %arg6[%c0_15, %c0_16] : memref<8x128xf32, #tpu.memory_space<vmem>>, vector<8x128xf32>
      tpu.vector_store %arg6[%c0_15, %c0_16], %25 {strides = array<i32>} : memref<8x128xf32, #tpu.memory_space<vmem>>, vector<8x128xf32>,
    } else {
    }
    return
  }
  func.func @transform_0(%arg0: i32, %arg1: i32) -> (i32, i32) {
    %c0_i32 = arith.constant 0 : i32
    %c0_i32_0 = arith.constant 0 : i32
    return %c0_i32, %arg1 : i32, i32
  }
  func.func @transform_1(%arg0: i32, %arg1: i32) -> (i32, i32) {
    %c0_i32 = arith.constant 0 : i32
    %c0_i32_0 = arith.constant 0 : i32
    return %c0_i32, %arg0 : i32, i32
  }
  func.func @transform_2(%arg0: i32, %arg1: i32) -> (i32, i32) {
    %c0_i32 = arith.constant 0 : i32
    return %arg1, %arg0 : i32, i32
  }
  func.func @transform_3(%arg0: i32, %arg1: i32) -> (i32, i32) {
    %c0_i32 = arith.constant 0 : i32
    %c0_i32_0 = arith.constant 0 : i32
    return %c0_i32, %arg0 : i32, i32
  }
  func.func @transform_4(%arg0: i32, %arg1: i32) -> (i32, i32) {
    %c0_i32 = arith.constant 0 : i32
    %c0_i32_0 = arith.constant 0 : i32
    return %c0_i32, %arg0 : i32, i32
  }
}

</mosaic_0001>

<bundles_post_ra>
// kernel: tpu_custom_call.1
= control target key start
LH: loop header
LB: loop body
LE: loop exit
PB: predicated region body
PF: predicated region fallthrough
CT: control target
= control target key end

     0   :  { %s1615_s0 = inlined_call_operand.hbm [shape: f32[24,256], index: 0, kind: input, shape index: {}]   ;;  %s1616_s1 = inlined_call_operand.hbm [shape: f32[24,256], index: 1, kind: input, shape index: {}]   ;;  %s1617_s2 = inlined_call_operand.hbm [shape: bf16[256,256], index: 2, kind: input, shape index: {}]   ;;  %s1618_s3 = inlined_call_operand.vmem [shape: f32[1,256], index: 3, kind: input, shape index: {}]   ;;  %s1619_s4 = inlined_call_operand.hbm [shape: f32[8,256], index: 4, kind: output, shape index: {}]  }
   0x1   :  { %1642 = sst [smem:[#allocation24_spill]] %s1616_s1 }
   0x2   :  { %1643 = sst [smem:[#allocation25_spill]] %s1618_s3 }
   0x3   :  { %1644 = sst [smem:[#allocation26_spill]] %s1619_s4 }
   0x4   :  { %9 = vsyncpa [#allocation4], 0 }
   0x5   :  { %11 = vsyncpa [#allocation4 + $0x1], 0 }
   0x6   :  { %12 = vsyncpa [#allocation7], 0 }
   0x7   :  { %14 = vsyncpa [#allocation7 + $0x1], 0 }
   0x8   :  { %15 = vsyncpa [#allocation5], 0 }
   0x9   :  { %17 = vsyncpa [#allocation5 + $0x1], 0  ;;  %s1215_s15 = smov 0   ;;  %s1217_s16 = smov 0  }
   0xa   :  { %s1219_s17 = smov 0   ;;  %s1221_s18 = smov 0  }
   0xb   :  { %s1223_s19 = smov 0   ;;  %s1225_s20 = smov 0  }
   0xc   :  { %s1227_s21 = smov 0   ;;  %s1229_s22 = smov 0  }
   0xd   :  { %s1231_s23 = smov 0   ;;  %s1233_s24 = smov 0  }
   0xe   :  { %s1235_s25 = smov 0   ;;  %s1237_s26 = smov 0  }
   0xf   :  { %s1239_s27 = smov 0   ;;  %s1241_s28 = smov 0  }
  0x10 LB: > { %1645 = sst [smem:[#allocation14_spill]] %s1136_s18  ;;  %s1286_s29 = sadd.s32 4294967295, %s1176_s28   ;;  %s1176_s28 = sphi %s1241_s28, %s23_s28   ;;  %s1172_s27 = sphi %s1239_s27, %s1712_s27   ;;  %s1168_s26 = sphi %s1237_s26, %s1711_s26   ;;  %s1164_s25 = sphi %s1235_s25, %s1710_s25   ;;  %s1160_s24 = sphi %s1233_s24, %s1709_s24   ;;  %s1156_s23 = sphi %s1231_s23, %s1708_s23   ;;  %s1152_s22 = sphi %s1229_s22, %s1707_s22   ;;  %s1148_s21 = sphi %s1227_s21, %s1706_s21   ;;  %s1144_s20 = sphi %s1225_s20, %s1705_s20   ;;  %s1140_s19 = sphi %s1223_s19, %s1704_s19   ;;  %s1136_s18 = sphi %s1221_s18, %s1703_s18   ;;  %s1132_s17 = sphi %s1219_s17, %s1702_s17   ;;  %s1128_s16 = sphi %s1217_s16, %s1701_s16   ;;  %s1124_s15 = sphi %s1215_s15, %s1700_s15  }
  0x11   : > { %1646 = sst [smem:[#allocation15_spill]] %s1140_s19  ;;  %s639_s30 = sadd.s32 4294967294, %s1176_s28  }
  0x12   : > { %1647 = sst [smem:[#allocation16_spill]] %s1152_s22  ;;  %p1625_p0 = scmp.eq.s32.totalorder %s1176_s28, 0 }
  0x13   : > { %1648 = sst [smem:[#allocation17_spill]] %s1160_s24  ;;  %p1624_p1 = scmp.eq.s32.totalorder %s1286_s29, 0 }
  0x14   : > { %1649 = sst [smem:[#allocation18_spill]] %s1164_s25  ;;  %p75_p2 = scmp.ne.s32.totalorder %s1144_s20, %s1140_s19 }
  0x15   : > { %p81_p3 = scmp.ne.s32.totalorder %s1140_s19, %s1136_s18  ;;  %p159_p4 = scmp.eq.s32.totalorder %s1286_s29, 3 }
  0x16   : > { %p165_p5 = scmp.eq.s32.totalorder %s639_s30, 3  ;;  %p77_p6 = por %p75_p2, %p1625_p0 }
  0x17   : > { %p1302_p7 = por %p81_p3, %p1624_p1  ;;  %p1306_p8 = por %p159_p4, %p75_p2 }
  0x18   : > { %p1310_p9 = por %p165_p5, %p81_p3  ;;  %p1623_p10 = scmp.lt.s32.totalorder %s1176_s28, 4 }
  0x19   : > { %s1650_s7 = scalar_select %p1302_p7, 1, 0 }
  0x1a   : > { %s1652_s8 = scalar_select %p1306_p8, 1, 0 }
  0x1b   : > { %1651 = sst [smem:[#allocation19_spill]] %s1650_s7  ;;  %s205_s10 = sand.u32 1, %s1176_s28  }
  0x1c   : > { %1653 = sst [smem:[#allocation20_spill]] %s1652_s8  ;;  %s207_s11 = sand.u32 1, %s1144_s20  }
  0x1d   : > { %s1654_s9 = scalar_select %p1310_p9, 1, 0 }
  0x1e   : > { %s791_s12 = smul.u32 24, %s207_s11  ;;  %s643_s13 = sshll.u32 %s1172_s27, 7 }
  0x1f   : > { %1655 = sst [smem:[#allocation21_spill]] %s1654_s9  ;;  %p1325_p11 = pnand %p1623_p10, %p77_p6 }
  0x20   : > { %s1656_s1 = sld [smem:[#allocation24_spill]]  ;;  %p648_p12 = scmp.ge.s32.totalorder %s1176_s28, 1 }
  0x21   : > { %s209_s18 = scalar_lea.vmem [#allocation6], %s791_s12  ;;  %p252_p13 = scmp.lt.s32.totalorder %s1176_s28, 5 }
  0x22   : > { %s215_s4 = sshll.u32 %s209_s18, 4  ;;  %s1331_s9 = scalar_lea.sflag [#allocation7], %s205_s10  ;;  %s216_s4 = int_to_ptr.vmem [resolvable:$true] %s215_s4 }
  0x23   : > { %p942_p2 = pneg %p1325_p11  ;;  %s953_s11 = scalar_lea.vmem %s216_s4, 384 }
  0x24   : > { %p954_p3 = scmp.ne.s32.totalorder %s216_s4, %s953_s11 }
  0x26   : > { %s1321_s6 = scalar_lea.hbm %s1656_s1, %s643_s13  ;;  %p956_p4 = pnand %p954_p3, %p942_p2 }
  0x27   : > { %s1178_s13 = smov [#allocation6]  }
  0x28   : > { %p957_p5 = pneg %p956_p4  ;;  %s958_s14 = sshll.u32 %s1178_s13, 4  ;;  %s959_s14 = int_to_ptr.vmem [resolvable:$false] %s958_s14 }
  0x29   : > { %s960_s30 = scalar_lea.vmem %s959_s14, 768  ;;  %p961_p6 = scmp.lt.s32.totalorder %s216_s4, %s959_s14 }
  0x2a   : > { %p962_p10 = scmp.lt.s32.totalorder %s960_s30, %s953_s11 }
  0x2c   : > { %p963_p1 = por %p962_p10, %p961_p6 }
  0x2e   : > { %p964_p0 = pnand %p963_p1, %p957_p5 }
  0x30   : > { %967 = shalt.err (!%p964_p0)
}
  0x31   : > { %s1626_s18 = smov 256   ;;  %s1627_s10 = smov 128  }
  0x32   : > { %s1629_s12 = smov 8   ;;  %p1346_p0 = pnand %p648_p12, %p252_p13 }
  0x33   : > { %808 = dma.hbm_to_vmem [thread:$0]  (!%p1325_p11), %s1321_s6, 384, %s216_s4, %s1331_s9, %s1626_s18, %s1627_s10, %s1629_s12  }
  0x34   : > { %s32_s13 = sadd.s32 1, %s1168_s26  ;;  %s42_s14 = sadd.s32 1, %s1156_s23 }
  0x35   : > { %p33_p1 = scmp.ge.s32.totalorder %s32_s13, 2  ;;  %p49_p10 = scmp.ne.s32.totalorder %s1156_s23, %s1152_s22 }
  0x36   : > { %p55_p2 = scmp.ne.s32.totalorder %s1152_s22, %s1148_s21  ;;  %s1660_s5 = sadd.s32 1, %s1172_s27 }
  0x37   : > { %s1714_s13 = smov (%p33_p1, %s32_s13), 0  ;;  %s1716_s5 = smov (!%p33_p1, %s1660_s5), %s1172_s27 }
  0x38   : > { %1659 = sst [smem:[#allocation22_spill]] %s1714_s13  ;;  %s39_s4 = ssub.s32 %s1168_s26, %s1714_s13 }
  0x39   : > { %p1661_p11 = scmp.eq.s32.totalorder %s1176_s28, 0  ;;  %p37_p13 = scmp.ge.s32.totalorder %s1716_s5, 2 }
  0x3a   : > { %p40_p3 = scmp.eq.s32.totalorder %s39_s4, 0  ;;  %p1663_p4 = scmp.eq.s32.totalorder %s1286_s29, 0 }
  0x3b   : > { %p1365_p12 = por %p1661_p11, %p49_p10  ;;  %s185_s30 = sand.u32 1, %s1156_s23  }
  0x3c   : > { %p1371_p5 = por %p1663_p4, %p55_p2  ;;  %s1718_s5 = smov (%p37_p13, %s1716_s5), 0 }
  0x3d   : > { %s1379_s18 = scalar_select %p40_p3, %s1156_s23, %s42_s14  }
  0x3e   : > { %s1664_s21 = scalar_select %p1371_p5, 1, 0 }
  0x3f   : > { %s65_s10 = ssub.s32 %s1172_s27, %s1718_s5  ;;  %s790_s13 = smul.u32 24, %s185_s30 }
  0x40   : > { %1665 = sst [smem:[#allocation23_spill]] %s1664_s21  ;;  %p66_p6 = scmp.eq.s32.totalorder %s65_s10, 0 }
  0x41   : > { %s93_s12 = sor.u32 %s65_s10, %s39_s4  ;;  %s1667_s8 = sadd.s32 1, %s1144_s20 }
  0x42   : > { %p1383_p1 = scmp.eq.s32.totalorder %s93_s12, 0  ;;  %s642_s3 = sshll.u32 %s1168_s26, 7 }
  0x43   : > { %s1390_s24 = scalar_select %p66_p6, %s1144_s20, %s1667_s8  }
  0x44   : > { %s194_s19 = scalar_lea.hbm %s1615_s0, %s642_s3  ;;  %s189_s21 = scalar_lea.vmem [#allocation3], %s790_s13 }
  0x45   : > { %s195_s22 = sshll.u32 %s189_s21, 4  ;;  %p1668_p10 = scmp.lt.s32.totalorder %s1176_s28, 4  ;;  %s196_s22 = int_to_ptr.vmem [resolvable:$true] %s195_s22 }
  0x46   : > { %s186_s12 = scalar_lea.sflag [#allocation4], %s185_s30  ;;  %s981_s8 = scalar_lea.vmem %s196_s22, 384 }
  0x47   : > { %p1400_p2 = pnand %p1668_p10, %p1365_p12  ;;  %p982_p13 = scmp.ne.s32.totalorder %s196_s22, %s981_s8 }
  0x48   : > { %s1182_s14 = smov [#allocation3]  }
  0x49   : > { %p970_p11 = pneg %p1400_p2  ;;  %s986_s25 = sshll.u32 %s1182_s14, 4  ;;  %s987_s25 = int_to_ptr.vmem [resolvable:$false] %s986_s25 }
  0x4a   : > { %s988_s3 = scalar_lea.vmem %s987_s25, 768  ;;  %p989_p6 = scmp.lt.s32.totalorder %s196_s22, %s987_s25 }
  0x4b   : > { %p984_p3 = pnand %p982_p13, %p970_p11  ;;  %p990_p9 = scmp.lt.s32.totalorder %s988_s3, %s981_s8 }
  0x4d   : > { %p985_p4 = pneg %p984_p3  ;;  %p991_p8 = por %p990_p9, %p989_p6 }
  0x4f   : > { %p992_p7 = pnand %p991_p8, %p985_p4 }
  0x51   : > { %995 = shalt.err (!%p992_p7)
}
  0x52   : > { %s1670_s7 = smov 8   ;;  %s1671_s13 = smov 128  }
  0x53   : > { %s1672_s4 = smov 256   ;;  %s96_s6 = sadd.s32 1, %s1132_s17 }
  0x54   : > { %805 = dma.hbm_to_vmem [thread:$0]  (!%p1400_p2), %s194_s19, 384, %s196_s22, %s186_s12, %s1672_s4, %s1671_s13, %s1670_s7  }
  0x55   : > { %s1415_s21 = scalar_select %p1383_p1, %s1132_s17, %s96_s6  }
  0x56   : > { %p103_p7 = scmp.ne.s32.totalorder %s1132_s17, %s1128_s16  ;;  %p109_p8 = scmp.ne.s32.totalorder %s1128_s16, %s1124_s15 }
  0x57   : > { %s227_s30 = sand.u32 1, %s1132_s17   ;;  %s658_s10 = sshll.u32 %s1168_s26, 5 }
  0x58   : > { %p1673_p9 = scmp.eq.s32.totalorder %s1176_s28, 0  ;;  %p1674_p10 = scmp.eq.s32.totalorder %s1286_s29, 0 }
  0x59   : > { %s644_s14 = sshll.u32 %s227_s30, 6  ;;  %s235_s25 = sadd.s32 %s1172_s27, %s658_s10 }
  0x5a   : > { %p105_p12 = por %p103_p7, %p1673_p9  ;;  %p1427_p11 = por %p109_p8, %p1674_p10 }
  0x5b   : > { %s647_s3 = sshll.u32 %s235_s25, 6  ;;  %s229_s12 = scalar_lea.vmem [#allocation8], %s644_s14 }
  0x5c   : > { %s237_s1 = scalar_lea.hbm %s1617_s2, %s647_s3  ;;  %s238_s7 = sshll.u32 %s229_s12, 4  ;;  %s239_s7 = int_to_ptr.vmem [resolvable:$true] %s238_s7 }
  0x5d   : > { %p1676_p1 = scmp.lt.s32.totalorder %s1176_s28, 4  ;;  %s1009_s4 = scalar_lea.vmem %s239_s7, 1024 }
  0x5e   : > { %p1010_p3 = scmp.ne.s32.totalorder %s239_s7, %s1009_s4  ;;  %s1183_s6 = smov [#allocation8]  }
  0x5f   : > { %p1437_p2 = pnand %p1676_p1, %p105_p12  ;;  %s1014_s30 = sshll.u32 %s1183_s6, 4  ;;  %s1015_s30 = int_to_ptr.vmem [resolvable:$false] %s1014_s30 }
  0x60   : > { %s1016_s10 = scalar_lea.vmem %s1015_s30, 2048  ;;  %p1017_p7 = scmp.lt.s32.totalorder %s239_s7, %s1015_s30 }
  0x61   : > { %p998_p13 = pneg %p1437_p2  ;;  %p1018_p8 = scmp.lt.s32.totalorder %s1016_s10, %s1009_s4 }
  0x63   : > { %p1012_p4 = pnand %p1010_p3, %p998_p13  ;;  %p1019_p9 = por %p1018_p8, %p1017_p7 }
  0x65   : > { %p1013_p6 = pneg %p1012_p4 }
  0x67   : > { %p1020_p10 = pnand %p1019_p9, %p1013_p6 }
  0x69   : > { %1023 = shalt.err (!%p1020_p10)
}
  0x6a   : > { %s1184_s14 = smov 64   ;;  %s1185_s25 = smov 4  }
  0x6b   : > { %811 = dma.hbm_to_vmem [thread:$0]  (!%p1437_p2), %s237_s1, 1024, %s239_s7, %s1331_s9, %s1671_s13, %s1184_s14, %s1185_s25  }
  0x6c   : > { %256 = sbr.rel (%p1346_p0) target bundleno = 447 (0x1bf), region = 36  ;;  %s1678_s3 = sld [smem:[#allocation16_spill]] (!%p1346_p0) }
  0x72   : > { %s258_s22 = sand.u32 1, %s1678_s3  }
  0x73   : > { %s792_s12 = smul.u32 24, %s258_s22  ;;  %s259_s6 = scalar_lea.sflag [#allocation4], %s258_s22 }
  0x75   : > { %s1450_s30 = scalar_lea.vmem [#allocation3], %s792_s12 }
  0x76   : > { %1107 = dma.done.wait (%p1371_p5), %s259_s6, 384  }
  0x77   : > { %1109 = vsyncadd (%p1371_p5), %s259_s6, 4294966912  ;;  %s1680_s4 = sld [smem:[#allocation15_spill]]  ;;  %s267_s10 = sand.u32 1, %s1286_s29  }
  0x78   : > { %s1681_s15 = sld [smem:[#allocation19_spill]]  ;;  %s268_s13 = scalar_lea.sflag [#allocation7], %s267_s10 }
  0x7d   : > { %s1458_s9 = sand.u32 1, %s1680_s4  }
  0x7e   : > { %s793_s11 = smul.u32 24, %s1458_s9  ;;  %p1682_p0 = scmp.ne.s32.totalorder %s1681_s15, 0 }
  0x80   : > { %s1461_s1 = scalar_lea.vmem [#allocation6], %s793_s11 }
  0x81   : > { %1111 = dma.done.wait (%p1682_p0), %s268_s13, 384  }
  0x82   : > { %1113 = vsyncadd (%p1682_p0), %s268_s13, 4294966912  ;;  %s278_s7 = sand.u32 1, %s1128_s16  }
  0x83   : > { %s649_s14 = sshll.u32 %s278_s7, 6 }
  0x84   : > { %s1468_s25 = scalar_lea.vmem [#allocation8], %s649_s14 }
  0x85   : > { %1115 = dma.done.wait (%p1427_p11), %s268_s13, 1024  }
  0x86   : > { %1117 = vsyncadd (%p1427_p11), %s268_s13, 4294966272  ;;  %s1683_s29 = sld [smem:[#allocation18_spill]]  ;;  %s650_s3 = sshll.u32 %s1458_s9, 3 }
  0x87   : > { %s1684_s12 = sld [smem:[#allocation25_spill]]  ;;  %s1483_s4 = scalar_lea.vmem [#allocation9], %s650_s3 }
  0x88   : > { %s1685_s15 = sld [smem:[#allocation17_spill]] }
  0x8c   : > { %p319_p5 = scmp.lt.s32.totalorder %s1683_s29, 1 }
  0x8e   : > { %s1720_s29 = smov (!%p319_p5, %s1683_s29), 1  ;;  %p651_p12 = scmp.ne.s32.totalorder %s1685_s15, 0 }
  0x8f   : > { %s321_s6 = scalar_lea.vmem %s1684_s12, %s1720_s29 }
  0x90   : > { %325 = sbr.rel (%p651_p12) target bundleno = 152 (0x98), region = 52 }
  0x95   : > { %v1186_v0 = vmov 0.0  }
  0x96   : > { %326 = vst [vmem:[#allocation2 + $0x10] sm:$0xff] %v1186_v0  ;;  %327 = vst [vmem:[#allocation2] sm:$0xff] %v1186_v0 }
  0x97   : > { %328 = vst [vmem:[#allocation2 + $0x8] sm:$0xff] %v1186_v0 }
  0x98 PF: > { %v697_v1 = vld [vmem:[%s1468_s25 + $0x38] sm:$0xff]   ;;  %v696_v2 = vld [vmem:[%s1468_s25 + $0x30] sm:$0xff]   ;;  %v1187_v3 = vmov 0.0   ;;  %vm1188_vm0 = vmmov 0   ;;  %v695_v7 = vld [vmem:[%s1468_s25 + $0x28] sm:$0xff]   ;;  %s1686_s8 = sld [smem:[#allocation17_spill]] }
  0x99   : > { %758 = vmatprep.subr.mxu1 %v1187_v3  ;;  %v689_v4 = vunpack.c.l.bf16 %v697_v1  ;;  %v690_v5 = vunpack.c.h.bf16 %v697_v1  ;;  %717 = vmatprep.subr.mxu0 %v1187_v3  ;;  %v686_v6 = vunpack.c.h.bf16 %v696_v2  ;;  %v685_v8 = vunpack.c.l.bf16 %v696_v2  ;;  %v694_v10 = vld [vmem:[%s1468_s25 + $0x20] sm:$0xff]   ;;  %v693_v13 = vld [vmem:[%s1468_s25 + $0x18] sm:$0xff]   ;;  %v692_v16 = vld [vmem:[%s1468_s25 + $0x10] sm:$0xff]  }
  0x9a   : > { %752 = vmatprep.mubr.msk.f32.mxu1 %vm1188_vm0, %v1187_v3  ;;  %749 = vmatprep.mubr.msk.f32.mxu0 %vm1188_vm0, %v1187_v3  ;;  %v682_v9 = vunpack.c.h.bf16 %v695_v7  ;;  %v681_v11 = vunpack.c.l.bf16 %v695_v7  ;;  %v678_v12 = vunpack.c.h.bf16 %v694_v10  ;;  %v677_v14 = vunpack.c.l.bf16 %v694_v10  ;;  %v691_v19 = vld [vmem:[%s1468_s25 + $0x8] sm:$0xff]   ;;  %v660_v22 = vld [vmem:[%s1468_s25] sm:$0xff]  }
  0x9b   : > { %774 = vmatpush3.msra.mxu1 %v690_v5  ;;  %718 = vmatpush3.msra.mxu0 %v690_v5  ;;  %v674_v15 = vunpack.c.h.bf16 %v693_v13  ;;  %v673_v17 = vunpack.c.l.bf16 %v693_v13  ;;  %v670_v18 = vunpack.c.h.bf16 %v692_v16  ;;  %v669_v20 = vunpack.c.l.bf16 %v692_v16  ;;  %v333_v26 = vld [vmem:[%s1450_s30 + $0x8] sm:$0xff]  ;;  %v332_v27 = vld [vmem:[%s1450_s30] sm:$0xff]  ;;  %v334_v28 = vld [vmem:[%s1450_s30 + $0x10] sm:$0xff] }
  0x9c   : > { %759 = vmatprep.subr.mxu1 %v1187_v3  ;;  %719 = vmatprep.subr.mxu0 %v1187_v3  ;;  %v666_v21 = vunpack.c.h.bf16 %v691_v19  ;;  %v665_v23 = vunpack.c.l.bf16 %v691_v19  ;;  %v662_v24 = vunpack.c.h.bf16 %v660_v22  ;;  %v661_v25 = vunpack.c.l.bf16 %v660_v22 }
  0x9d   : > { %775 = vmatpush3.msra.mxu1 %v689_v4  ;;  %720 = vmatpush3.msra.mxu0 %v689_v4  ;;  %v330_v29 = vld [vmem:[#allocation2] sm:$0xff]  ;;  %v329_v30 = vld [vmem:[#allocation2 + $0x10] sm:$0xff] }
  0x9e   : > { %760 = vmatprep.subr.mxu1 %v1187_v3  ;;  %721 = vmatprep.subr.mxu0 %v1187_v3  ;;  %v331_v37 = vld [vmem:[#allocation2 + $0x8] sm:$0xff]  ;;  %p652_p11 = scmp.ne.s32.totalorder %s1686_s8, 1 }
  0x9f   : > { %776 = vmatpush3.msra.mxu1 %v686_v6  ;;  %722 = vmatpush3.msra.mxu0 %v686_v6 }
  0xa0   : > { %761 = vmatprep.subr.mxu1 %v1187_v3  ;;  %723 = vmatprep.subr.mxu0 %v1187_v3 }
  0xa1   : > { %777 = vmatpush3.msra.mxu1 %v685_v8  ;;  %724 = vmatpush3.msra.mxu0 %v685_v8 }
  0xa2   : > { %762 = vmatprep.subr.mxu1 %v1187_v3  ;;  %725 = vmatprep.subr.mxu0 %v1187_v3 }
  0xa3   : > { %778 = vmatpush3.msra.mxu1 %v682_v9  ;;  %726 = vmatpush3.msra.mxu0 %v682_v9 }
  0xa4   : > { %763 = vmatprep.subr.mxu1 %v1187_v3  ;;  %727 = vmatprep.subr.mxu0 %v1187_v3 }
  0xa5   : > { %779 = vmatpush3.msra.mxu1 %v681_v11  ;;  %728 = vmatpush3.msra.mxu0 %v681_v11 }
  0xa6   : > { %764 = vmatprep.subr.mxu1 %v1187_v3  ;;  %729 = vmatprep.subr.mxu0 %v1187_v3 }
  0xa7   : > { %780 = vmatpush3.msra.mxu1 %v678_v12  ;;  %730 = vmatpush3.msra.mxu0 %v678_v12 }
  0xa8   : > { %765 = vmatprep.subr.mxu1 %v1187_v3  ;;  %731 = vmatprep.subr.mxu0 %v1187_v3 }
  0xa9   : > { %781 = vmatpush3.msra.mxu1 %v677_v14  ;;  %732 = vmatpush3.msra.mxu0 %v677_v14 }
  0xaa   : > { %766 = vmatprep.subr.mxu1 %v1187_v3  ;;  %733 = vmatprep.subr.mxu0 %v1187_v3 }
  0xab   : > { %782 = vmatpush3.msra.mxu1 %v674_v15  ;;  %734 = vmatpush3.msra.mxu0 %v674_v15 }
  0xac   : > { %767 = vmatprep.subr.mxu1 %v1187_v3  ;;  %735 = vmatprep.subr.mxu0 %v1187_v3 }
  0xad   : > { %783 = vmatpush3.msra.mxu1 %v673_v17  ;;  %736 = vmatpush3.msra.mxu0 %v673_v17 }
  0xae   : > { %768 = vmatprep.subr.mxu1 %v1187_v3  ;;  %737 = vmatprep.subr.mxu0 %v1187_v3 }
  0xaf   : > { %784 = vmatpush3.msra.mxu1 %v670_v18  ;;  %738 = vmatpush3.msra.mxu0 %v670_v18 }
  0xb0   : > { %769 = vmatprep.subr.mxu1 %v1187_v3  ;;  %739 = vmatprep.subr.mxu0 %v1187_v3 }
  0xb1   : > { %785 = vmatpush3.msra.mxu1 %v669_v20  ;;  %740 = vmatpush3.msra.mxu0 %v669_v20 }
  0xb2   : > { %770 = vmatprep.subr.mxu1 %v1187_v3  ;;  %741 = vmatprep.subr.mxu0 %v1187_v3 }
  0xb3   : > { %786 = vmatpush3.msra.mxu1 %v666_v21  ;;  %742 = vmatpush3.msra.mxu0 %v666_v21 }
  0xb4   : > { %771 = vmatprep.subr.mxu1 %v1187_v3  ;;  %743 = vmatprep.subr.mxu0 %v1187_v3 }
  0xb5   : > { %787 = vmatpush3.msra.mxu1 %v665_v23  ;;  %744 = vmatpush3.msra.mxu0 %v665_v23 }
  0xb6   : > { %772 = vmatprep.subr.mxu1 %v1187_v3  ;;  %745 = vmatprep.subr.mxu0 %v1187_v3 }
  0xb7   : > { %788 = vmatpush3.msra.mxu1 %v662_v24  ;;  %746 = vmatpush3.msra.mxu0 %v662_v24 }
  0xb8   : > { %773 = vmatprep.subr.mxu1 %v1187_v3  ;;  %747 = vmatprep.subr.mxu0 %v1187_v3 }
  0xb9   : > { %789 = vmatpush3.msra.mxu1 %v661_v25  ;;  %748 = vmatpush3.msra.mxu0 %v661_v25 }
  0xba   : > { %753 = vmatmul.mubr.f32.vlgmr.msra.gmra.mxu1 %v333_v26  ;;  %750 = vmatmul.mubr.f32.vlgmr.msra.gmra.mxu0 %v332_v27 }
  0xbb   : > { %755 = vmatprep.mubr.msk.f32.mxu1 %vm1188_vm0, %v1187_v3 }
  0xbe   : > { %756 = vmatmul.mubr.f32.gmra.mxu1 %v334_v28 }
 0x17a   : > { %v438_v31 = vpop.f32.mrf.mxu1  ;;  %v433_v32 = vpop.f32.mrf.mxu0 }
 0x17b   : > { %v448_v33 = vadd.f32 %v438_v31, %v330_v29  ;;  %v447_v34 = vadd.f32 %v433_v32, %v329_v30 }
 0x17c   : > { %v754_v35 = vpop.f32.mrf.mxu1  ;;  %v751_v36 = vpop.f32.mrf.mxu0 }
 0x17d   : > { %451 = vst [vmem:[#allocation2] sm:$0xff] %v448_v33  ;;  %450 = vst [vmem:[#allocation2 + $0x10] sm:$0xff] %v447_v34  ;;  %456 = sbr.rel (%p652_p11) target bundleno = 420 (0x1a4), region = 56 }
 0x17e   : > { %v443_v38 = vpop.f32.mrf.mxu1 }
 0x17f   : > { %v449_v39 = vadd.f32 %v443_v38, %v331_v37 }
 0x180   : > { %v757_v40 = vpop.f32.mrf.mxu1 }
 0x181   : > { %452 = vst [vmem:[#allocation2 + $0x8] sm:$0xff] %v449_v39 }
 0x182   : > { %v457_v41 = vld [vmem:[%s1461_s1] sm:$0xff]  ;;  %v458_v45 = vld [vmem:[%s1461_s1 + $0x8] sm:$0xff]  ;;  %v459_v46 = vld [vmem:[%s1461_s1 + $0x10] sm:$0xff] }
 0x183   : > { %v653_v47 = vld [vmem:[%s321_s6] ss:$0 sm:$0xff] }
 0x184   : > { %v460_v42 = vld [vmem:[#allocation2 + $0x10] sm:$0xff]  ;;  %v461_v43 = vld [vmem:[#allocation2] sm:$0xff] }
 0x185   : > { %v470_v48 = vmul.f32 %v653_v47, %v460_v42  ;;  %v471_v49 = vmul.f32 %v653_v47, %v461_v43 }
 0x187   : > { %v473_v51 = vsub.f32 %v457_v41, %v470_v48  ;;  %v474_v52 = vsub.f32 %v458_v45, %v471_v49 }
 0x188   : > { %v462_v44 = vld [vmem:[#allocation2 + $0x8] sm:$0xff] }
 0x189   : > { %v472_v50 = vmul.f32 %v653_v47, %v462_v44  ;;  %v476_v54 = vmul.f32 %v473_v51, %v473_v51  ;;  %v477_v55 = vmul.f32 %v474_v52, %v474_v52 }
 0x18b   : > { %v475_v53 = vsub.f32 %v459_v46, %v472_v50  ;;  %v479_v57 = vadd.f32 %v477_v55, %v476_v54 }
 0x18d   : > { %v478_v56 = vmul.f32 %v475_v53, %v475_v53 }
 0x18f   : > { %v480_v58 = vadd.f32 %v479_v57, %v478_v56 }
 0x191   : > { %938 = vrsqrt.f32 %v480_v58  ;;  %vm483_vm1 = vcmp.eq.f32.partialorder %v480_v58, inf  ;;  %v486_v60 = vand.u32 2147483648, %v480_v58  ;;  %vm485_vm2 = vcmp.eq.f32.partialorder %v480_v58, 0.0 }
 0x19e   : > { %v939_v59 = vpop.eup %938 }
 0x19f   : > { %v482_v61 = vmul.f32 %v939_v59, %v480_v58 }
 0x1a1   : > { %v484_v62 = vsel %vm483_vm1, %v480_v58, %v482_v61 }
 0x1a2   : > { %v487_v63 = vsel %vm485_vm2, %v486_v60, %v484_v62 }
 0x1a3   : > { %488 = vst [vmem:[%s1483_s4] sm:$0xff] %v487_v63 }
 0x1a4 PF: > { %s1688_s13 = sld [smem:[#allocation18_spill]]  ;;  %s503_s19 = sshll.u32 %s1483_s4, 4  ;;  %s504_s19 = int_to_ptr.vmem [resolvable:$true] %s503_s19 }
 0x1a5   : > { %s1689_s1 = sld [smem:[#allocation20_spill]]  ;;  %s490_s22 = scalar_lea.sflag [#allocation5], %s1458_s9 }
 0x1a6   : > { %s1690_s29 = sld [smem:[#allocation26_spill]]  ;;  %s1024_s12 = scalar_lea.vmem %s504_s19, 128 }
 0x1a7   : > { %p1025_p1 = scmp.ne.s32.totalorder %s504_s19, %s1024_s12  ;;  %s1189_s6 = smov [#allocation9]  }
 0x1a8   : > { %s1028_s15 = sshll.u32 %s1189_s6, 4  ;;  %s1029_s15 = int_to_ptr.vmem [resolvable:$false] %s1028_s15 }
 0x1a9   : > { %s1030_s8 = scalar_lea.vmem %s1029_s15, 256  ;;  %p1031_p4 = scmp.lt.s32.totalorder %s504_s19, %s1029_s15 }
 0x1aa   : > { %s655_s7 = sshll.u32 %s1688_s13, 7  ;;  %p1032_p6 = scmp.lt.s32.totalorder %s1030_s8, %s1024_s12 }
 0x1ab   : > { %p1691_p2 = scmp.ne.s32.totalorder %s1689_s1, 0 }
 0x1ac   : > { %s501_s3 = scalar_lea.hbm %s1690_s29, %s655_s7  ;;  %p1033_p7 = por %p1032_p6, %p1031_p4 }
 0x1ad   : > { %p1026_p13 = pnand %p1025_p1, %p1691_p2 }
 0x1af   : > { %p1027_p3 = pneg %p1026_p13 }
 0x1b1   : > { %p1034_p8 = pnand %p1033_p7, %p1027_p3 }
 0x1b3   : > { %1037 = shalt.err (!%p1034_p8)
}
 0x1b4   : > { %s1038_s30 = scalar_lea.hbm %s501_s3, 128  ;;  %s1042_s10 = scalar_lea.hbm %s1690_s29, 256 }
 0x1b5   : > { %p1039_p9 = scmp.ne.s32.totalorder %s501_s3, %s1038_s30  ;;  %p1043_p5 = scmp.lt.s32.totalorder %s501_s3, %s1690_s29 }
 0x1b6   : > { %p1044_p12 = scmp.lt.s32.totalorder %s1042_s10, %s1038_s30 }
 0x1b7   : > { %p1040_p10 = pnand %p1039_p9, %p1691_p2 }
 0x1b8   : > { %p1045_p11 = por %p1044_p12, %p1043_p5 }
 0x1b9   : > { %p1041_p0 = pneg %p1040_p10 }
 0x1bb   : > { %p1046_p1 = pnand %p1045_p11, %p1041_p0 }
 0x1bd   : > { %1049 = shalt.err (!%p1046_p1)
}
 0x1be   : > { %800 = dma.vmem_to_hbm [thread:$0]  (%p1691_p2), %s504_s19, 128, %s501_s3, %s490_s22  }
 0x1bf PF: > { %s1692_s7 = sld [smem:[#allocation14_spill]]  ;;  %p817_p13 = scmp.ge.s32.totalorder %s1176_s28, 2 }
 0x1c0   : > { %s1693_s14 = sld [smem:[#allocation21_spill]] }
 0x1c5   : > { %s515_s25 = sand.u32 1, %s1692_s7  }
 0x1c6   : > { %p1694_p3 = scmp.ne.s32.totalorder %s1693_s14, 0  ;;  %s516_s12 = scalar_lea.sflag [#allocation5], %s515_s25 }
 0x1c8   : > { %p813_p4 = pnand %p817_p13, %p1694_p3 }
 0x1ca   : > { %p814_p6 = pneg %p813_p4 }
 0x1cc   : > { %1119 = dma.done.wait (%p814_p6), %s516_s12, 128  }
 0x1cd   : > { %1121 = vsyncadd (%p814_p6), %s516_s12, 4294967168  ;;  %s23_s28 = sadd.s32 1, %s1176_s28   ;;  %s1696_s1 = sld [smem:[#allocation15_spill]] }
 0x1ce   : > { %p1568_p7 = scmp.ge.s32.totalorder %s23_s28, 6   ;;  %s1697_s3 = sld [smem:[#allocation16_spill]] }
 0x1cf   : > { %s1698_s8 = smov %s1379_s18  ;;  %s1699_s30 = sld [smem:[#allocation22_spill]] }
 0x1d0   : > { %s1700_s15 = smov %s1128_s16  ;;  %s1701_s16 = smov %s1132_s17 }
 0x1d1   : > { %s1702_s17 = smov %s1415_s21  ;;  %s1704_s19 = smov %s1144_s20 }
 0x1d2   : > { %s1705_s20 = smov %s1390_s24  ;;  %s1707_s22 = smov %s1156_s23 }
 0x1d3   : > { %s1703_s18 = smov %s1696_s1  ;;  %s1708_s23 = smov %s1698_s8 }
 0x1d4   : > { %s1706_s21 = smov %s1697_s3  ;;  %s1709_s24 = smov %s1168_s26 }
 0x1d5   : > { %s1710_s25 = smov %s1172_s27  ;;  %s1711_s26 = smov %s1699_s30 }
 0x1d6   : > { %s1712_s27 = smov %s1718_s5  ;;  %22 = sbr.rel (!%p1568_p7) target bundleno = 16 (0x10), region = 116 }
 0x1db   :  { %521 = vsyncpa [#allocation4], 1 }
 0x1dc   :  { %523 = vsyncpa [#allocation4 + $0x1], 1 }
 0x1dd   :  { %524 = vsyncpa [#allocation7], 1 }
 0x1de   :  { %526 = vsyncpa [#allocation7 + $0x1], 1 }
 0x1df   :  { %527 = vsyncpa [#allocation5], 1 }
 0x1e0   :  { %529 = vsyncpa [#allocation5 + $0x1], 1 }

</bundles_post_ra>
